<compile_context>
chip_gen: v6e
topology: v6e:2x2x1
jax: 0.10.0
libtpu: 0.0.40
codegen_flags: <defaults>
</compile_context>

<pallas_src>
import functools
import numpy as np

import jax
import jax.numpy as jnp
from jax import lax
from jax.experimental import pallas as pl
from jax.experimental.pallas import tpu as pltpu


def _round_up(v, m):
    return -(-v // m) * m


def _bucket(n, granule=64):
    return max(granule, _round_up(max(n, 1), granule))


_TPU_VMEM_CACHE = None


def _vmem_info():
    """(tile budget, vmem_limit_bytes) derived from the chip's VMEM capacity."""
    global _TPU_VMEM_CACHE
    if _TPU_VMEM_CACHE is None:
        cap = 128 * 1024 * 1024
        try:
            info_cap = int(pltpu.get_tpu_info().vmem_capacity_bytes)
            if info_cap >= (32 << 20):
                cap = info_cap
        except Exception:
            pass
        budget = max(cap // 2 - (4 << 20), 24 << 20)
        limit = int(min(cap * 3 // 4, 2 * budget))
        _TPU_VMEM_CACHE = (budget, limit)
    return _TPU_VMEM_CACHE


def _pick_tile(dim, cap, align):
    """Pick a tile (multiple of `align`) for a dimension `dim` (already a multiple of
    `align`). Returns (tile, padded_dim) with padded_dim % tile == 0 and minimal pad."""
    cap = max(align, (min(cap, dim) // align) * align)
    if dim <= cap:
        return dim, dim
    best = None
    for cand in range(cap, align - 1, -align):
        if dim % cand == 0:
            best = cand
            break
    if best is not None and best >= max(align, cap // 8):
        return best, dim
    # ragged: balanced split (avoids nearly doubling the padding of the old fallback)
    n_blocks = -(-dim // cap)
    tile = _round_up(-(-dim // n_blocks), align)
    return tile, _round_up(dim, tile)


# ----------------------------------------------------------------------------
# Pallas GEMM kernel:  o = affine(maybe_relu((sum_i x_i) @ w + b))
# refs order: x_refs..., w, b, [scale, shift], out, [acc_scratch]
# grid = (B, M tiles, N tiles, K tiles); K innermost ("arbitrary"), rest parallel.
# ----------------------------------------------------------------------------
def _gemm_kernel(*refs, n_x, relu, affine, k_steps, use_scratch):
    x_refs = refs[:n_x]
    w_ref = refs[n_x]
    b_ref = refs[n_x + 1]
    nxt = n_x + 2
    if affine:
        s_ref = refs[nxt]
        t_ref = refs[nxt + 1]
        nxt += 2
    else:
        s_ref = t_ref = None
    o_ref = refs[nxt]
    acc_ref = refs[nxt + 1] if use_scratch else None

    x = x_refs[0][0]
    for xr in x_refs[1:]:
        x = x + xr[0]                        # fused elementwise add (VPU slack under MXU)
    part = jnp.dot(x, w_ref[0], preferred_element_type=jnp.float32)

    def _epilogue(acc):
        y = acc + b_ref[0]
        if relu:
            y = jnp.maximum(y, 0.0)
        if affine:
            y = y * s_ref[0] + t_ref[0]
        return y.astype(o_ref.dtype)

    if k_steps == 1:
        # Single K step: no accumulator traffic at all -- dot + epilogue straight out.
        o_ref[0] = _epilogue(part)
        return

    k = pl.program_id(3)
    if use_scratch:
        # narrow output dtype: keep an f32 scratch accumulator
        @pl.when(k == 0)
        def _():
            acc_ref[...] = part

        @pl.when(k > 0)
        def _():
            acc_ref[...] += part

        @pl.when(k == k_steps - 1)
        def _():
            o_ref[0] = _epilogue(acc_ref[...])
    else:
        # f32 output: accumulate directly into the block-resident output tile
        @pl.when(k == 0)
        def _():
            o_ref[0] = part

        @pl.when(k > 0)
        def _():
            o_ref[0] = o_ref[0] + part

        @pl.when(k == k_steps - 1)
        def _():
            o_ref[0] = _epilogue(o_ref[0])


def pallas_fused_linear(xs, w, b=None, *, relu=False, scale=None, shift=None,
                        out_dtype=jnp.float32):
    """Fused linear: (sum_i x_i) @ w + b, optional ReLU, optional eval-BN affine.

    xs: one array or list of arrays, each (M, K) or (B, M, K); summed before matmul.
    w : (K', N) or (B, K', N) with K' >= K; typically pre-padded to a 128-multiple and
        pre-cast to bf16 at init. Output dtype is `out_dtype`.
    """
    if not isinstance(xs, (list, tuple)):
        xs = [xs]
    xs = [jnp.asarray(x) for x in xs]
    w = jnp.asarray(w)

    squeeze_batch = xs[0].ndim == 2
    if squeeze_batch:
        xs = [x[None] for x in xs]
        w = w[None]
    B, M, K = xs[0].shape
    for x in xs:
        assert x.shape == (B, M, K)
    Bw, Kw, N = w.shape
    assert Bw == B and Kw >= K

    affine = (scale is not None) or (shift is not None)
    n_x = len(xs)

    # ----- geometry / tile selection (VMEM-budget aware) -----
    Np = _round_up(N, 128)
    Kp = _round_up(Kw, 128)
    Mp0 = _round_up(max(M, 1), 8)

    xb = jnp.dtype(w.dtype).itemsize             # x is cast to w.dtype
    ob = jnp.dtype(out_dtype).itemsize
    n_vec = 1 + (2 if affine else 0)
    budget, vmem_limit = _vmem_info()

    def _footprint(mt, kt, nt, use_scratch):
        f = n_x * 2 * mt * kt * xb               # inputs (double-buffered)
        f += 2 * kt * nt * xb                    # weight tile
        f += n_vec * 2 * nt * 4                  # bias / scale / shift rows
        f += 2 * mt * nt * ob                    # output tile
        if use_scratch:
            f += mt * nt * 4                     # f32 accumulator
        return f

    mt_cap, kt_cap, nt_cap = 1024, 2048, Np
    while True:
        kt, Kp2 = _pick_tile(Kp, kt_cap, 128)
        nt, Np2 = _pick_tile(Np, nt_cap, 128)
        mt, Mp2 = _pick_tile(Mp0, mt_cap, 8)
        k_steps = Kp2 // kt
        use_scratch = (k_steps > 1) and (ob < 4)
        if _footprint(mt, kt, nt, use_scratch) <= budget:
            break
        if mt_cap > 128:
            mt_cap //= 2
        elif kt_cap > 256:
            kt_cap //= 2
        elif nt_cap > 128:
            nt_cap //= 2
        else:
            break                                # minimal config; run with it
    Kp, Np, Mp = Kp2, Np2, Mp2

    # v7x has 2 TensorCores sharded over parallel grid axes: ensure >=2 parallel blocks.
    if B * (Mp // mt) * (Np // nt) < 2:
        if nt % 256 == 0:
            nt //= 2
        elif Mp >= 16:
            mt = _round_up(max(Mp // 2, 8), 8)
            Mp = _round_up(Mp, mt)

    grid = (B, Mp // mt, Np // nt, Kp // kt)
    k_steps = Kp // kt
    use_scratch = (k_steps > 1) and (ob < 4)

    # ----- operand padding / casting (no-ops when params were prepared) -----
    def _pad_x(x):
        if x.dtype != w.dtype:
            x = x.astype(w.dtype)
        if (Mp, Kp) != (M, K):
            x = jnp.pad(x, ((0, 0), (0, Mp - M), (0, Kp - K)))
        return x

    xps = [_pad_x(x) for x in xs]

    wp = w
    if (Kp, Np) != (Kw, N):
        wp = jnp.pad(wp, ((0, 0), (0, Kp - Kw), (0, Np - N)))

    def _as_vec(v, fill):
        if v is None:
            return jnp.full((B, 1, Np), fill, jnp.float32)
        v = jnp.asarray(v, jnp.float32).reshape(-1, N)
        if v.shape[0] == 1 and B > 1:
            v = jnp.broadcast_to(v, (B, N))
        v = v[:, None, :]
        if Np != N:
            v = jnp.pad(v, ((0, 0), (0, 0), (0, Np - N)))
        return v

    operands = xps + [wp, _as_vec(b, 0.0)]
    if affine:
        operands += [_as_vec(scale, 1.0), _as_vec(shift, 0.0)]

    x_spec = pl.BlockSpec((1, mt, kt), lambda bi, i, j, k: (bi, i, k))
    w_spec = pl.BlockSpec((1, kt, nt), lambda bi, i, j, k: (bi, k, j))
    v_spec = pl.BlockSpec((1, 1, nt), lambda bi, i, j, k: (bi, 0, j))
    in_specs = [x_spec] * n_x + [w_spec, v_spec]
    if affine:
        in_specs += [v_spec, v_spec]

    out = pl.pallas_call(
        functools.partial(_gemm_kernel, n_x=n_x, relu=relu, affine=affine,
                          k_steps=k_steps, use_scratch=use_scratch),
        out_shape=jax.ShapeDtypeStruct((B, Mp, Np), out_dtype),
        grid_spec=pltpu.PrefetchScalarGridSpec(
            num_scalar_prefetch=0,
            grid=grid,
            in_specs=in_specs,
            out_specs=pl.BlockSpec((1, mt, nt), lambda bi, i, j, k: (bi, i, j)),
            scratch_shapes=([pltpu.VMEM((mt, nt), jnp.float32)] if use_scratch else []),
        ),
        compiler_params=pltpu.CompilerParams(
            dimension_semantics=("parallel", "parallel", "parallel", "arbitrary"),
            vmem_limit_bytes=vmem_limit,
        ),
    )(*operands)

    out = out[:, :M, :N]
    if squeeze_batch:
        out = out[0]
    return out


# ----------------------------------------------------------------------------
# Conv helpers: NHWC im2col in (jitted) glue, GEMM with fused bias/ReLU/BN in Pallas
# ----------------------------------------------------------------------------
def im2col_nhwc(x, kh, kw, stride, pad):
    N, H, W, C = x.shape
    xp = jnp.pad(x, ((0, 0), (pad, pad), (pad, pad), (0, 0)))
    Ho = (H + 2 * pad - kh) // stride + 1
    Wo = (W + 2 * pad - kw) // stride + 1
    cols = []
    for i in range(kh):
        for j in range(kw):
            cols.append(xp[:, i:i + stride * (Ho - 1) + 1:stride,
                              j:j + stride * (Wo - 1) + 1:stride, :])
    p = jnp.stack(cols, axis=3)                       # (N, Ho, Wo, kh*kw, C)
    p = p.reshape(N * Ho * Wo, kh * kw * C)           # rows (n,h,w); cols (kh,kw,C)
    return p, Ho, Wo


def conv2d_nhwc(x, w_mat, b, kh, kw, *, stride, pad, relu=False,
                bn_scale=None, bn_shift=None, out_dtype=jnp.float32):
    """x: (N,H,W,C) NHWC; w_mat: (>=kh*kw*C, O) pre-permuted/padded bf16. Returns NHWC."""
    # TODO(synk): in-kernel im2col (K-grid over taps) would avoid materializing the
    # duplicated patch matrix in HBM; kept in XLA glue for lowering robustness.
    patches, Ho, Wo = im2col_nhwc(x, kh, kw, stride, pad)
    y = pallas_fused_linear(patches, w_mat, b, relu=relu, scale=bn_scale,
                            shift=bn_shift, out_dtype=out_dtype)
    N = x.shape[0]
    O = w_mat.shape[-1]
    return y.reshape(N, Ho, Wo, O)


def maxpool_nhwc(x, k=3, s=2, p=1):
    init = jnp.array(-jnp.inf, dtype=x.dtype)
    return lax.reduce_window(x, init, lax.max,
                             (1, k, k, 1), (1, s, s, 1),
                             [(0, 0), (p, p), (p, p), (0, 0)])


def bn_eval_scale_shift(gamma, beta, mean, var, eps=1e-5):
    s = gamma / jnp.sqrt(var + eps)
    return s, beta - mean * s


# ----------------------------------------------------------------------------
# ROIAlign as bilinear-weight matmuls (no gathers, NHWC output)
# ----------------------------------------------------------------------------
def roi_align_nhwc(fmaps, rois, out_size=7, spatial_scale=1.0 / 16.0, samples=2):
    """fmaps: (B, C, H, W); rois: (P, 5) [batch, x1, y1, x2, y2]. Returns (P, s, s, C).

    TODO(synk): torchvision ROIAlign(sampling_ratio=0) uses adaptive ceil(bin) samples;
    approximated with fixed 2x2 bilinear sampling per bin, expressed as matmuls.
    """
    P = rois.shape[0]
    Bf, C, H, W = fmaps.shape
    batch = rois[:, 0].astype(jnp.int32)
    x1 = rois[:, 1] * spatial_scale
    y1 = rois[:, 2] * spatial_scale
    x2 = rois[:, 3] * spatial_scale
    y2 = rois[:, 4] * spatial_scale
    roi_w = jnp.maximum(x2 - x1, 1.0)
    roi_h = jnp.maximum(y2 - y1, 1.0)
    bw = roi_w / out_size
    bh = roi_h / out_size
    frac = (jnp.arange(samples, dtype=jnp.float32) + 0.5) / samples
    grid = jnp.arange(out_size, dtype=jnp.float32)[:, None] + frac[None, :]    # (s, k)
    sy = jnp.clip(y1[:, None, None] + grid[None] * bh[:, None, None], 0.0, H - 1.0)
    sx = jnp.clip(x1[:, None, None] + grid[None] * bw[:, None, None], 0.0, W - 1.0)
    hh = jnp.arange(H, dtype=jnp.float32)
    ww = jnp.arange(W, dtype=jnp.float32)
    # bilinear weights (triangle kernel), averaged over the samples of each bin
    Ay = jnp.maximum(0.0, 1.0 - jnp.abs(sy[..., None] - hh)).mean(axis=2)      # (P,s,H)
    Ax = jnp.maximum(0.0, 1.0 - jnp.abs(sx[..., None] - ww)).mean(axis=2)      # (P,s,W)
    onehot = (batch[:, None] == jnp.arange(Bf, dtype=jnp.int32)[None, :]).astype(jnp.float32)
    Ayb = onehot[:, None, :, None] * Ay[:, :, None, :]                          # (P,s,B,H)
    hp = jax.lax.Precision.HIGHEST
    t = jnp.einsum('bchw,pobh->powc', fmaps, Ayb, precision=hp,
                   preferred_element_type=jnp.float32)                          # (P,s,W,C)
    out = jnp.einsum('powc,pqw->poqc', t, Ax, precision=hp,
                     preferred_element_type=jnp.float32)                        # (P,s,s,C)
    return out


# ----------------------------------------------------------------------------
# Host-side data-dependent logic (numpy), run entirely before the device program
# ----------------------------------------------------------------------------
def draw_union_boxes_np(pair_rois, size):
    # TODO(synk): original is a Cython rasterizer; re-implemented with per-pixel
    # box-coverage fractions (same [0,1] value range and layout).
    P = pair_rois.shape[0]
    boxes = pair_rois.reshape(P, 2, 4).astype(np.float32)
    ux1 = boxes[:, :, 0].min(1)
    uy1 = boxes[:, :, 1].min(1)
    ux2 = boxes[:, :, 2].max(1)
    uy2 = boxes[:, :, 3].max(1)
    w = np.maximum(ux2 - ux1, 1e-6)
    h = np.maximum(uy2 - uy1, 1e-6)
    out = np.zeros((P, 2, size, size), np.float32)
    xs = np.arange(size, dtype=np.float32)
    for c in range(2):
        bx1 = (boxes[:, c, 0] - ux1) / w * (size - 1)
        by1 = (boxes[:, c, 1] - uy1) / h * (size - 1)
        bx2 = (boxes[:, c, 2] - ux1) / w * (size - 1)
        by2 = (boxes[:, c, 3] - uy1) / h * (size - 1)
        cov_x = np.clip(np.minimum(xs[None, :] + 1.0, bx2[:, None] + 1.0)
                        - np.maximum(xs[None, :], bx1[:, None]), 0.0, 1.0)
        cov_y = np.clip(np.minimum(xs[None, :] + 1.0, by2[:, None] + 1.0)
                        - np.maximum(xs[None, :], by1[:, None]), 0.0, 1.0)
        out[:, c] = cov_y[:, :, None] * cov_x[:, None, :]
    return out


def _host_preprocess(entry):
    entry = dict(entry)
    boxes_np = np.asarray(entry['boxes'], np.float32)
    dist_np = np.asarray(entry['distribution'], np.float32)
    pred_labels = np.asarray(entry['pred_labels']).copy()
    pred_scores = np.asarray(entry['pred_scores'], np.float32).copy()

    box_idx = boxes_np[:, 0].astype(np.int64)
    b = len(np.unique(box_idx))
    global_idx = np.arange(boxes_np.shape[0])

    HUMAN_IDX = np.zeros((b, 1), dtype=np.int64)
    for i in range(b):
        mask = box_idx == i
        local_human_idx = int(np.argmax(dist_np[mask, 0]))
        HUMAN_IDX[i] = global_idx[mask][local_human_idx]
    pred_labels[HUMAN_IDX.squeeze()] = 0
    pred_scores[HUMAN_IDX.squeeze()] = dist_np[HUMAN_IDX.squeeze(), 0]

    im_idx, pair = [], []
    for j, hi in enumerate(HUMAN_IDX):
        fmask = box_idx == j
        for m in global_idx[fmask][pred_labels[fmask] != 0]:
            im_idx.append(j)
            pair.append([int(hi[0]), int(m)])
    pair = np.asarray(pair, dtype=np.int64).reshape(-1, 2)
    im_idx = np.asarray(im_idx, dtype=np.float32)
    P = pair.shape[0]

    im_info = float(entry['im_info'])
    boxes_scaled = boxes_np.copy()
    boxes_scaled[:, 1:] *= im_info
    union_boxes_np = np.concatenate(
        [im_idx[:, None],
         np.minimum(boxes_scaled[pair[:, 0], 1:3], boxes_scaled[pair[:, 1], 1:3]),
         np.maximum(boxes_scaled[pair[:, 0], 3:5], boxes_scaled[pair[:, 1], 3:5])],
        axis=1)
    pair_rois = np.concatenate([boxes_np[pair[:, 0], 1:], boxes_np[pair[:, 1], 1:]], axis=1)
    masks_np = draw_union_boxes_np(pair_rois, 27) - 0.5       # (P, 2, 27, 27) NCHW

    # bucket/pad the pair dimension so compiles are one-time per bucket
    P_pad = _bucket(P, 64)
    pad_n = P_pad - P
    pair_pad = np.concatenate([pair, np.zeros((pad_n, 2), np.int64)], axis=0)
    union_boxes_pad = np.concatenate([union_boxes_np, np.zeros((pad_n, 5), np.float32)], 0)
    masks_nhwc_pad = np.zeros((P_pad, 27, 27, 2), np.float32)
    masks_nhwc_pad[:P] = masks_np.transpose(0, 2, 3, 1)

    entry['pred_labels'] = jnp.asarray(pred_labels, jnp.int32)
    entry['pred_scores'] = jnp.asarray(pred_scores, jnp.float32)
    entry['pair_idx'] = jnp.asarray(pair, jnp.int32)
    entry['im_idx'] = jnp.asarray(im_idx, jnp.float32)
    entry['human_idx'] = jnp.asarray(HUMAN_IDX, jnp.int32)
    entry['union_box'] = jnp.asarray(union_boxes_np, jnp.float32)
    entry['spatial_masks'] = jnp.asarray(masks_np, jnp.float32)      # NCHW, reference layout
    # entry['boxes'] unchanged (reference scales then un-scales by im_info; net no-op)

    # TODO(synk): reference ROI_Feature also computes obj_embed / pos_embed / obj_features
    # (and constructs decoder_lin), all unused downstream; dropped here as dead code.
    host = {
        'num_pairs': P,
        'pair_pad': jnp.asarray(pair_pad, jnp.int32),
        'union_boxes_pad': jnp.asarray(union_boxes_pad, jnp.float32),
        'masks_nhwc_pad': jnp.asarray(masks_nhwc_pad, jnp.float32),
    }
    return entry, host


# ----------------------------------------------------------------------------
# Fully jitted device program (shapes fixed per bucket -> one compile per bucket)
# ----------------------------------------------------------------------------
def _device_forward(params, feats, fmaps, union_boxes_pad, masks_nhwc_pad,
                    pair_pad, pred_labels):
    P_pad = pair_pad.shape[0]

    # ROIAlign (NHWC out, matmul formulation)
    union_nhwc = roi_align_nhwc(fmaps, union_boxes_pad, 7, 1.0 / 16.0)     # (Pp,7,7,1024)

    # subj_fc + obj_fc merged into ONE batched Pallas GEMM (leading parallel axis 2)
    x_so = jnp.stack([feats[pair_pad[:, 0]], feats[pair_pad[:, 1]]], axis=0)
    so = pallas_fused_linear(x_so, params['subj_obj_w'], params['subj_obj_b'])

    # union_func1: 1x1 conv as channel GEMM on NHWC rows; bf16 intermediate
    u_rows = union_nhwc.reshape(P_pad * 49, union_nhwc.shape[-1])
    u = pallas_fused_linear(u_rows, params['union1_w_mat'], params['union1_b'],
                            out_dtype=jnp.bfloat16)
    u_flat = u.reshape(P_pad, -1)                                           # (h,w,c)-flat

    # spatial-mask branch, NHWC end-to-end, bf16 intermediates:
    # Conv7x7/s2 +bias+ReLU+BN -> MaxPool3x3/s2 -> Conv3x3 +bias+ReLU+BN
    m = masks_nhwc_pad.astype(jnp.bfloat16)
    y = conv2d_nhwc(m, params['conv1_w_mat'], params['conv1_b'], 7, 7,
                    stride=2, pad=3, relu=True,
                    bn_scale=params['bn1_scale'], bn_shift=params['bn1_shift'],
                    out_dtype=jnp.bfloat16)
    y = maxpool_nhwc(y, 3, 2, 1)
    y = conv2d_nhwc(y, params['conv2_w_mat'], params['conv2_b'], 3, 3,
                    stride=1, pad=1, relu=True,
                    bn_scale=params['bn2_scale'], bn_shift=params['bn2_shift'],
                    out_dtype=jnp.bfloat16)
    y_flat = y.reshape(P_pad, -1)                                           # (h,w,c)-flat

    # vr_fc with the union+spatial elementwise add fused into the (multi-K) GEMM
    vr = pallas_fused_linear([u_flat, y_flat], params['vr_fc_w_mat'], params['vr_fc_b'])

    subj_class = pred_labels[pair_pad[:, 0]]
    obj_class = pred_labels[pair_pad[:, 1]]
    subj_emb = jnp.take(params['obj_embed_w'], subj_class, axis=0)
    obj_emb = jnp.take(params['obj_embed2_w'], obj_class, axis=0)

    rel_features = jnp.concatenate([so[0], so[1], vr, subj_emb, obj_emb], axis=1)
    return union_nhwc, rel_features


_device_forward_jit = jax.jit(_device_forward)


def final_relation_feature_forward(entry, params):
    entry, host = _host_preprocess(entry)
    P = host['num_pairs']

    union_nhwc_pad, rel_features_pad = _device_forward_jit(
        params,
        jnp.asarray(entry['features'], jnp.float32),
        jnp.asarray(entry['fmaps'], jnp.float32),
        host['union_boxes_pad'],
        host['masks_nhwc_pad'],
        host['pair_pad'],
        entry['pred_labels'],
    )

    entry['union_feat'] = union_nhwc_pad[:P].transpose(0, 3, 1, 2)   # NCHW (reference layout)
    rel_features = rel_features_pad[:P]
    # The reference forward returns `entry` (rel_features computed but not stored);
    # rel_features is returned here as well for verification.
    return entry, rel_features


# ----------------------------------------------------------------------------
# Deterministic parameter init (fresh module, eval mode) + one-time re-layout
# ----------------------------------------------------------------------------
def init_params(key, num_obj_classes):
    ks = jax.random.split(key, 12)

    def rn(k, shape, s=0.02):
        return jax.random.normal(k, shape, jnp.float32) * s

    p = {}
    p['union1_w'] = rn(ks[2], (256, 1024, 1, 1))
    p['union1_b'] = jnp.zeros((256,), jnp.float32)
    p['conv1_w'] = rn(ks[3], (128, 2, 7, 7), 0.05)
    p['conv1_b'] = jnp.zeros((128,), jnp.float32)
    p['bn1_gamma'] = jnp.ones((128,), jnp.float32)
    p['bn1_beta'] = jnp.zeros((128,), jnp.float32)
    p['bn1_mean'] = jnp.zeros((128,), jnp.float32)
    p['bn1_var'] = jnp.ones((128,), jnp.float32)
    p['conv2_w'] = rn(ks[4], (256, 128, 3, 3), 0.05)
    p['conv2_b'] = jnp.zeros((256,), jnp.float32)
    p['bn2_gamma'] = jnp.ones((256,), jnp.float32)
    p['bn2_beta'] = jnp.zeros((256,), jnp.float32)
    p['bn2_mean'] = jnp.zeros((256,), jnp.float32)
    p['bn2_var'] = jnp.ones((256,), jnp.float32)
    p['subj_fc_w'] = rn(ks[5], (512, 2048))
    p['subj_fc_b'] = jnp.zeros((512,), jnp.float32)
    p['obj_fc_w'] = rn(ks[6], (512, 2048))
    p['obj_fc_b'] = jnp.zeros((512,), jnp.float32)
    p['vr_fc_w'] = rn(ks[7], (512, 256 * 7 * 7))
    p['vr_fc_b'] = jnp.zeros((512,), jnp.float32)
    p['obj_embed_w'] = rn(ks[8], (num_obj_classes, 200), 0.1)    # glove stand-in
    p['obj_embed2_w'] = rn(ks[9], (num_obj_classes, 200), 0.1)
    # TODO(synk): glocal_transformer / a_s_c_rel_compress / decoder_lin / ROI_Feature's
    # obj_embed+pos_embed are constructed in __init__ but never affect this forward's
    # outputs; not implemented.
    return p


def prepare_params(p):
    """One-time weight re-layout: permute, pad K to 128-multiples, pre-cast to bf16,
    fold eval-mode BatchNorm -- so the forward pass never pads/permutes weights."""
    bf = jnp.bfloat16
    q = dict(p)
    # union_func1 1x1 conv: (O,C,1,1) -> (C, O)
    q['union1_w_mat'] = p['union1_w'].reshape(256, 1024).T.astype(bf)
    # convs for NHWC im2col with (kh, kw, C) column order: (O,C,kh,kw) -> (kh*kw*C, O)
    w1 = p['conv1_w'].transpose(2, 3, 1, 0).reshape(7 * 7 * 2, 128)
    q['conv1_w_mat'] = jnp.pad(w1, ((0, 128 - 98), (0, 0))).astype(bf)   # pre-pad K 98->128
    q['conv2_w_mat'] = p['conv2_w'].transpose(2, 3, 1, 0).reshape(3 * 3 * 128, 256).astype(bf)
    # subj_fc / obj_fc merged: (2, K, N)
    q['subj_obj_w'] = jnp.stack([p['subj_fc_w'].T, p['obj_fc_w'].T], axis=0).astype(bf)
    q['subj_obj_b'] = jnp.stack([p['subj_fc_b'], p['obj_fc_b']], axis=0)
    # vr_fc columns reordered from PyTorch's (c,h,w) flatten to our (h,w,c) flatten
    q['vr_fc_w_mat'] = (p['vr_fc_w'].reshape(512, 256, 7, 7)
                        .transpose(0, 2, 3, 1).reshape(512, 7 * 7 * 256).T.astype(bf))
    # eval-mode BatchNorm folded to per-channel scale/shift (applied after bias+ReLU,
    # matching nn.Sequential(Conv, ReLU, BatchNorm))
    q['bn1_scale'], q['bn1_shift'] = bn_eval_scale_shift(
        p['bn1_gamma'], p['bn1_beta'], p['bn1_mean'], p['bn1_var'])
    q['bn2_scale'], q['bn2_shift'] = bn_eval_scale_shift(
        p['bn2_gamma'], p['bn2_beta'], p['bn2_mean'], p['bn2_var'])
    return q


# ----------------------------------------------------------------------------
if __name__ == "__main__":
    key = jax.random.PRNGKey(0)
    num_obj_classes = 9          # ['__background__'] + 8 object classes
    num_frames = 2
    boxes_per_frame = 4
    Nb = num_frames * boxes_per_frame

    keys = jax.random.split(key, 10)
    features = jax.random.normal(keys[0], (Nb, 2048), jnp.float32)
    xy1 = jax.random.uniform(keys[1], (Nb, 2), minval=5.0, maxval=100.0)
    wh = jax.random.uniform(keys[2], (Nb, 2), minval=20.0, maxval=100.0)
    frame_col = jnp.repeat(jnp.arange(num_frames, dtype=jnp.float32), boxes_per_frame)[:, None]
    boxes = jnp.concatenate([frame_col, xy1, xy1 + wh], axis=1)          # (Nb, 5)
    distribution = jax.nn.softmax(
        jax.random.normal(keys[3], (Nb, num_obj_classes - 1), jnp.float32), axis=1)
    pred_labels = jax.random.randint(keys[4], (Nb,), 1, num_obj_classes).astype(jnp.int32)
    pred_scores = jax.random.uniform(keys[5], (Nb,), dtype=jnp.float32)
    fmaps = jax.random.normal(keys[6], (num_frames, 1024, 16, 16), jnp.float32)

    entry = {
        'boxes': boxes,
        'features': features,
        'distribution': distribution,
        'pred_labels': pred_labels,
        'pred_scores': pred_scores,
        'fmaps': fmaps,
        'im_info': 1.0,
    }

    params = prepare_params(init_params(jax.random.PRNGKey(1), num_obj_classes))

    # quick numeric sanity check of the fused GEMM kernel vs plain jnp
    xt = jax.random.normal(keys[7], (96, 320), jnp.float32)
    wt = jax.random.normal(keys[8], (320, 256), jnp.float32) * 0.05
    bt = jax.random.normal(keys[9], (256,), jnp.float32)
    ref = jnp.maximum(xt @ wt + bt, 0.0)
    got = pallas_fused_linear(xt, wt.astype(jnp.bfloat16), bt, relu=True)
    rel_err = jnp.max(jnp.abs(ref - got)) / (jnp.max(jnp.abs(ref)) + 1e-6)
    assert float(rel_err) < 0.05, f"GEMM kernel mismatch: rel_err={float(rel_err)}"

    out_entry, rel_features = final_relation_feature_forward(entry, params)
    jax.block_until_ready(out_entry['union_feat'])
    jax.block_until_ready(rel_features)

    P = out_entry['pair_idx'].shape[0]
    assert rel_features.shape == (P, 1936)
    assert out_entry['union_feat'].shape == (P, 1024, 7, 7)
    assert out_entry['spatial_masks'].shape == (P, 2, 27, 27)
    assert bool(jnp.all(jnp.isfinite(rel_features)))

    print("KERNEL_OK")
</pallas_src>

<mosaic_0001>
module attributes {stable_mosaic.version = 11 : i64} {
  func.func @_gemm_kernel(%arg0: i32, %arg1: i32, %arg2: i32, %arg3: i32, %arg4: memref<1x96x384xbf16, #tpu.memory_space<vmem>>, %arg5: memref<1x384x128xbf16, #tpu.memory_space<vmem>>, %arg6: memref<1x1x128xf32, #tpu.memory_space<vmem>>, %arg7: memref<1x96x128xf32, #tpu.memory_space<vmem>>) attributes {dimension_semantics = [#tpu.dimension_semantics<parallel>, #tpu.dimension_semantics<parallel>, #tpu.dimension_semantics<parallel>, #tpu.dimension_semantics<arbitrary>], iteration_bounds = array<i64: 1, 1, 2, 1>, scalar_prefetch = 0 : i64, scratch_operands = 0 : i64, tpu.core_type = #tpu.core_type<tc>, window_params = [{transform_indices = @transform_0, window_bounds = array<i64: 1, 96, 384>}, {transform_indices = @transform_1, window_bounds = array<i64: 1, 384, 128>}, {transform_indices = @transform_2, window_bounds = array<i64: 1, 1, 128>}, {transform_indices = @transform_3, window_bounds = array<i64: 1, 96, 128>}]} {
    %c0 = arith.constant 0 : index
    %c0_0 = arith.constant 0 : index
    %c0_1 = arith.constant 0 : index
    %0 = vector.load %arg4[%c0, %c0_0, %c0_1] : memref<1x96x384xbf16, #tpu.memory_space<vmem>>, vector<1x96x384xbf16>
    %1 = vector.shape_cast %0 : vector<1x96x384xbf16> to vector<96x384xbf16>
    %c0_2 = arith.constant 0 : index
    %c0_3 = arith.constant 0 : index
    %c0_4 = arith.constant 0 : index
    %2 = vector.load %arg5[%c0_2, %c0_3, %c0_4] : memref<1x384x128xbf16, #tpu.memory_space<vmem>>, vector<1x384x128xbf16>
    %3 = vector.shape_cast %2 : vector<1x384x128xbf16> to vector<384x128xbf16>
    %cst = arith.constant dense<0.000000e+00> : vector<96x128xf32>
    %4 = tpu.matmul %1, %3, %cst {dimension_numbers = #tpu.dot_dimension_numbers<[1], [0], [0], [1], [0, 0, 1, 1], [], []>} : vector<96x384xbf16>, vector<384x128xbf16>, vector<96x128xf32> -> vector<96x128xf32>
    %c0_5 = arith.constant 0 : index
    %c0_6 = arith.constant 0 : index
    %c0_7 = arith.constant 0 : index
    %5 = vector.load %arg6[%c0_5, %c0_6, %c0_7] : memref<1x1x128xf32, #tpu.memory_space<vmem>>, vector<1x1x128xf32>
    %6 = vector.shape_cast %5 : vector<1x1x128xf32> to vector<1x128xf32>
    %7 = vector.broadcast %6 : vector<1x128xf32> to vector<96x128xf32>
    %8 = arith.addf %4, %7 : vector<96x128xf32>
    %cst_8 = arith.constant 0.000000e+00 : f32
    %9 = vector.broadcast %cst_8 : f32 to vector<96x128xf32>
    %10 = arith.maximumf %8, %9 : vector<96x128xf32>
    %c0_9 = arith.constant 0 : index
    %c0_10 = arith.constant 0 : index
    %c0_11 = arith.constant 0 : index
    %11 = vector.load %arg7[%c0_9, %c0_10, %c0_11] : memref<1x96x128xf32, #tpu.memory_space<vmem>>, vector<1x96x128xf32>
    %12 = vector.shape_cast %11 : vector<1x96x128xf32> to vector<96x128xf32>
    %13 = vector.shape_cast %10 : vector<96x128xf32> to vector<1x96x128xf32>
    tpu.vector_store %arg7[%c0_9, %c0_10, %c0_11], %13 {strides = array<i32>} : memref<1x96x128xf32, #tpu.memory_space<vmem>>, vector<1x96x128xf32>,
    return
  }
  func.func @transform_0(%arg0: i32, %arg1: i32, %arg2: i32, %arg3: i32) -> (i32, i32, i32) {
    %c0_i32 = arith.constant 0 : i32
    return %arg0, %arg1, %arg3 : i32, i32, i32
  }
  func.func @transform_1(%arg0: i32, %arg1: i32, %arg2: i32, %arg3: i32) -> (i32, i32, i32) {
    %c0_i32 = arith.constant 0 : i32
    return %arg0, %arg3, %arg2 : i32, i32, i32
  }
  func.func @transform_2(%arg0: i32, %arg1: i32, %arg2: i32, %arg3: i32) -> (i32, i32, i32) {
    %c0_i32 = arith.constant 0 : i32
    %c0_i32_0 = arith.constant 0 : i32
    return %arg0, %c0_i32, %arg2 : i32, i32, i32
  }
  func.func @transform_3(%arg0: i32, %arg1: i32, %arg2: i32, %arg3: i32) -> (i32, i32, i32) {
    %c0_i32 = arith.constant 0 : i32
    return %arg0, %arg1, %arg2 : i32, i32, i32
  }
}

</mosaic_0001>

<bundles_post_ra>
// kernel: tpu_custom_call.1
= control target key start
LH: loop header
LB: loop body
LE: loop exit
PB: predicated region body
PF: predicated region fallthrough
CT: control target
= control target key end

     0   :  { %8 = vsyncpa [#allocation3], 0  ;;  %s1631_s0 = inlined_call_operand.hbm [shape: bf16[1,96,384], index: 0, kind: input, shape index: {}]   ;;  %s1632_s1 = inlined_call_operand.hbm [shape: bf16[1,384,256], index: 1, kind: input, shape index: {}]   ;;  %s1633_s2 = inlined_call_operand.vmem [shape: f32[1,1,256], index: 2, kind: input, shape index: {}]   ;;  %s1634_s3 = inlined_call_operand.hbm [shape: f32[1,96,256], index: 3, kind: output, shape index: {}]  }
   0x1   :  { %9 = vsyncpa [#allocation6], 0 }
   0x2   :  { %11 = vsyncpa [#allocation6 + $0x1], 0 }
   0x3   :  { %12 = vsyncpa [#allocation4], 0 }
   0x4   :  { %14 = vsyncpa [#allocation4 + $0x1], 0  ;;  %s1395_s12 = smov 0   ;;  %s1397_s13 = smov 0  }
   0x5   :  { %s1399_s14 = smov 0   ;;  %s1401_s15 = smov 0  }
   0x6   :  { %s1403_s16 = smov 0   ;;  %s1405_s17 = smov 0  }
   0x7 LB: > { %1640 = sst [smem:[#allocation11_spill]] %s1362_s17  ;;  %s944_s18 = sadd.s32 4294967295, %s1362_s17   ;;  %s1362_s17 = sphi %s1405_s17, %s20_s17   ;;  %s1358_s16 = sphi %s1403_s16, %s1660_s16   ;;  %s1354_s15 = sphi %s1401_s15, %s1659_s15   ;;  %s1350_s14 = sphi %s1399_s14, %s1658_s14   ;;  %s1346_s13 = sphi %s1397_s13, %s1657_s13   ;;  %s1342_s12 = sphi %s1395_s12, %s1656_s12  }
   0x8   : > { %s945_s19 = sadd.s32 4294967294, %s1362_s17   ;;  %p94_p0 = scmp.ne.s32.totalorder %s1350_s14, %s1346_s13 }
   0x9   : > { %p95_p1 = scmp.eq.s32.totalorder %s1362_s17, 0  ;;  %p100_p2 = scmp.ne.s32.totalorder %s1346_s13, %s1342_s12 }
   0xa   : > { %p1432_p3 = scmp.eq.s32.totalorder %s944_s18, 0  ;;  %p156_p5 = scmp.eq.s32.totalorder %s944_s18, 1 }
   0xb   : > { %p1436_p4 = por %p95_p1, %p94_p0  ;;  %p162_p7 = scmp.eq.s32.totalorder %s945_s19, 1 }
   0xc   : > { %p1442_p6 = por %p1432_p3, %p100_p2  ;;  %p1446_p8 = por %p156_p5, %p94_p0 }
   0xd   : > { %p946_p9 = scmp.ge.s32.totalorder %s1362_s17, 1  ;;  %p1451_p10 = por %p162_p7, %p100_p2 }
   0xe   : > { %s1643_s22 = scalar_select %p1442_p6, 1, 0 }
   0xf   : > { %s1644_s23 = scalar_select %p1446_p8, 1, 0 }
  0x10   : > { %s1645_s24 = scalar_select %p1451_p10, 1, 0 }
  0x11   : > { %p169_p11 = scmp.lt.s32.totalorder %s1362_s17, 3  ;;  %s1364_s26 = smov [#allocation2]  }
  0x12   : > { %1646 = sst [smem:[#allocation12_spill]] %s1645_s24  ;;  %s189_s27 = sshll.u32 %s1364_s26, 4  ;;  %s190_s27 = int_to_ptr.vmem [resolvable:$true] %s189_s27 }
  0x13   : > { %p1456_p12 = pnand %p946_p9, %p169_p11  ;;  %p1116_p1 = scmp.lt.s32.totalorder %s1362_s17, 2 }
  0x14   : > { %s38_s30 = sadd.s32 1, %s1358_s16  ;;  %s1235_s4 = scalar_lea.vmem %s190_s27, 2304 }
  0x15   : > { %p1103_p13 = pneg %p1456_p12  ;;  %p1472_p2 = pnand %p1116_p1, %p1436_p4 }
  0x16   : > { %p1236_p9 = scmp.ne.s32.totalorder %s190_s27, %s1235_s4  ;;  %p1243_p0 = scmp.lt.s32.totalorder %s190_s27, %s190_s27 }
  0x17   : > { %p1466_p5 = pnand %p1103_p13, %p1432_p3  ;;  %p1244_p8 = scmp.lt.s32.totalorder %s1235_s4, %s1235_s4 }
  0x19   : > { %p1226_p7 = pneg %p1466_p5  ;;  %p1245_p6 = por %p1244_p8, %p1243_p0 }
  0x1b   : > { %p1238_p11 = pnand %p1236_p9, %p1226_p7 }
  0x1d   : > { %p1239_p10 = pneg %p1238_p11 }
  0x1f   : > { %p1246_p13 = pnand %p1245_p6, %p1239_p10 }
  0x21   : > { %1249 = shalt.err (!%p1246_p13)
}
  0x22   : > { %s1365_s5 = smov 192   ;;  %s1366_s6 = smov 12  }
  0x23   : > { %1106 = dma.hbm_to_vmem [thread:$0]  (!%p1466_p5), %s1631_s0, 2304, %s190_s27, [#allocation3], %s1365_s5, %s1365_s5, %s1366_s6  }
  0x24   : > { %p40_p4 = scmp.ge.s32.totalorder %s38_s30, 2  ;;  %s87_s9 = sadd.s32 1, %s1350_s14 }
  0x25   : > { %s203_s10 = sand.u32 1, %s1350_s14   ;;  %s949_s19 = sshll.u32 %s1358_s16, 6 }
  0x26   : > { %s1662_s30 = smov (%p40_p4, %s38_s30), 0  ;;  %s1092_s11 = smul.u32 192, %s203_s10 }
  0x27   : > { %s83_s18 = ssub.s32 %s1358_s16, %s1662_s30  ;;  %s217_s4 = scalar_lea.hbm %s1632_s1, %s949_s19 }
  0x28   : > { %p85_p6 = scmp.eq.s32.totalorder %s83_s18, 0  ;;  %s207_s28 = scalar_lea.vmem [#allocation5], %s1092_s11 }
  0x29   : > { %s218_s17 = sshll.u32 %s207_s28, 4  ;;  %s204_s27 = scalar_lea.sflag [#allocation6], %s203_s10  ;;  %s219_s17 = int_to_ptr.vmem [resolvable:$true] %s218_s17 }
  0x2a   : > { %s1495_s24 = scalar_select %p85_p6, %s1350_s14, %s87_s9  }
  0x2b   : > { %p1252_p8 = pneg %p1472_p2  ;;  %s1263_s5 = scalar_lea.vmem %s219_s17, 3072 }
  0x2c   : > { %p1264_p10 = scmp.ne.s32.totalorder %s219_s17, %s1263_s5  ;;  %s1367_s6 = smov [#allocation5]  }
  0x2d   : > { %s1268_s7 = sshll.u32 %s1367_s6, 4  ;;  %s1269_s7 = int_to_ptr.vmem [resolvable:$false] %s1268_s7 }
  0x2e   : > { %p1266_p0 = pnand %p1264_p10, %p1252_p8  ;;  %s1270_s8 = scalar_lea.vmem %s1269_s7, 6144 }
  0x2f   : > { %p1271_p5 = scmp.lt.s32.totalorder %s219_s17, %s1269_s7  ;;  %p1272_p7 = scmp.lt.s32.totalorder %s1270_s8, %s1263_s5 }
  0x30   : > { %p1267_p1 = pneg %p1266_p0 }
  0x31   : > { %p1273_p9 = por %p1272_p7, %p1271_p5 }
  0x33   : > { %p1274_p11 = pnand %p1273_p9, %p1267_p1 }
  0x35   : > { %1277 = shalt.err (!%p1274_p11)
}
  0x36   : > { %s1368_s11 = smov 128   ;;  %s1369_s9 = smov 64  }
  0x37   : > { %s1370_s18 = smov 4   ;;  %240 = sbr.rel (%p1456_p12) target bundleno = 361 (0x169), region = 32 }
  0x38   : > { %1110 = dma.hbm_to_vmem [thread:$0]  (!%p1472_p2), %s217_s4, 3072, %s219_s17, %s204_s27, %s1368_s11, %s1369_s9, %s1370_s18  }
  0x3c   : > { %1329 = dma.done.wait (%p1432_p3), [#allocation3], 2304  }
  0x3d   : > { %1331 = vsyncadd (%p1432_p3), [#allocation3], 4294964992  ;;  %s1508_s10 = sand.u32 1, %s1346_s13   ;;  %p1650_p2 = scmp.ne.s32.totalorder %s1643_s22, 0 }
  0x3e   : > { %s1093_s19 = smul.u32 192, %s1508_s10  ;;  %s247_s21 = scalar_lea.sflag [#allocation6], %s1508_s10 }
  0x40   : > { %s1512_s26 = scalar_lea.vmem [#allocation5], %s1093_s19 }
  0x41   : > { %1333 = dma.done.wait (%p1650_p2), %s247_s21, 3072  }
  0x42   : > { %1335 = vsyncadd (%p1650_p2), %s247_s21, 4294964224  ;;  %v1176_v0 = vld [vmem:[%s1512_s26 + $0x78] sm:$0xff]   ;;  %v1178_v2 = vld [vmem:[%s1512_s26 + $0x70] sm:$0xff]   ;;  %p285_p3 = scmp.lt.s32.totalorder %s1354_s15, 1  ;;  %s1094_s29 = smul.u32 96, %s1508_s10 }
  0x43   : > { %v1177_v1 = vld [vmem:[%s1512_s26 + $0x38] sm:$0xff]   ;;  %998 = vmatprep.subr.bf16.mxu0 %v1176_v0  ;;  %v1180_v4 = vld [vmem:[%s1512_s26 + $0x30] sm:$0xff]   ;;  %v1181_v5 = vld [vmem:[%s1512_s26 + $0x68] sm:$0xff]   ;;  %s995_s28 = sshll.u32 %s1354_s15, 7  ;;  %s798_s8 = scalar_lea.sflag [#allocation4], %s1508_s10 }
  0x44   : > { %999 = vmatpush3.bf16.msra.mxu0 %v1177_v1  ;;  %v1179_v3 = vld [vmem:[%s1512_s26 + $0xb8] sm:$0xff]   ;;  %v1182_v6 = vld [vmem:[%s1512_s26 + $0xb0] sm:$0xff]   ;;  %v1183_v7 = vld [vmem:[%s1512_s26 + $0x28] sm:$0xff]   ;;  %s286_s17 = scalar_select %p285_p3, %s1354_s15, 1 }
  0x45   : > { %1000 = vmatprep.subr.bf16.mxu0 %v1178_v2  ;;  %1064 = vmatprep.subr.bf16.mxu1 %v1179_v3  ;;  %v1184_v8 = vld [vmem:[%s1512_s26 + $0x60] sm:$0xff]   ;;  %v1185_v9 = vld [vmem:[%s1512_s26 + $0xa8] sm:$0xff]   ;;  %v1187_v11 = vld [vmem:[%s1512_s26 + $0x58] sm:$0xff]   ;;  %s1552_s4 = scalar_lea.vmem [#allocation7], %s1094_s29  ;;  %s1580_s7 = scalar_lea.hbm %s1634_s3, %s995_s28 }
  0x46   : > { %1065 = vmatpush3.bf16.msra.mxu1 %v1179_v3  ;;  %v1186_v10 = vld [vmem:[%s1512_s26 + $0x20] sm:$0xff]   ;;  %v1189_v13 = vld [vmem:[%s1512_s26 + $0x18] sm:$0xff]   ;;  %v1190_v15 = vld [vmem:[%s1512_s26 + $0x50] sm:$0xff]   ;;  %s289_s25 = scalar_lea.vmem %s1633_s2, %s286_s17  ;;  %s815_s27 = sshll.u32 %s1552_s4, 4  ;;  %s1582_s27 = int_to_ptr.vmem [resolvable:$true] %s815_s27 }
  0x47   : > { %1066 = vmatprep.subr.bf16.mxu1 %v1182_v6  ;;  %v1188_v12 = vld [vmem:[%s1512_s26 + $0xa0] sm:$0xff]   ;;  %v1191_v14 = vld [vmem:[%s1512_s26 + $0x98] sm:$0xff]   ;;  %v1192_v16 = vld [vmem:[%s1512_s26 + $0x10] sm:$0xff]   ;;  %s1278_s15 = scalar_lea.vmem %s1582_s27, 1536  ;;  %p1651_p13 = scmp.ne.s32.totalorder %s1644_s23, 0 }
  0x48   : > { %1001 = vmatpush3.bf16.msra.mxu0 %v1180_v4  ;;  %v1194_v17 = vld [vmem:[%s1512_s26 + $0x90] sm:$0xff]   ;;  %v1193_v18 = vld [vmem:[%s1512_s26 + $0x48] sm:$0xff]   ;;  %v1196_v20 = vld [vmem:[%s1512_s26 + $0x40] sm:$0xff]   ;;  %p1279_p12 = scmp.ne.s32.totalorder %s1582_s27, %s1278_s15  ;;  %s1371_s11 = smov [#allocation7]  }
  0x49   : > { %1002 = vmatprep.subr.bf16.mxu0 %v1181_v5  ;;  %v1195_v19 = vld [vmem:[%s1512_s26 + $0x8] sm:$0xff]   ;;  %v1201_v22 = vld [vmem:[#allocation2 + $0x4] ss:$12 sps:$4 sm:$0xff]   ;;  %v1203_v24 = vld [vmem:[#allocation2 + $0x8] ss:$12 sps:$4 sm:$0xff]   ;;  %s1282_s9 = sshll.u32 %s1371_s11, 4  ;;  %s1283_s9 = int_to_ptr.vmem [resolvable:$false] %s1282_s9 }
  0x4a   : > { %1067 = vmatpush3.bf16.msra.mxu1 %v1182_v6  ;;  %v1197_v21 = vld [vmem:[%s1512_s26 + $0x88] sm:$0xff]   ;;  %v1198_v23 = vld [vmem:[%s1512_s26] sm:$0xff]   ;;  %643 = vmatprep.mubr.bf16.mxu0 %v1201_v22  ;;  %v1199_v26 = vld [vmem:[#allocation2] ss:$12 sps:$4 sm:$0xff]   ;;  %p1280_p4 = pnand %p1279_p12, %p1651_p13  ;;  %s1284_s18 = scalar_lea.vmem %s1283_s9, 3072 }
  0x4b   : > { %1068 = vmatprep.subr.bf16.mxu1 %v1185_v9  ;;  %v1202_v25 = vld [vmem:[%s1512_s26 + $0x80] sm:$0xff]   ;;  %1080 = vmatprep.mubr.bf16.mxu1 %v1203_v24  ;;  %v1205_v27 = vld [vmem:[#allocation2 + $0x1c] ss:$12 sps:$4 sm:$0xff]   ;;  %v1204_v28 = vld [vmem:[#allocation2 + $0x20] ss:$12 sps:$4 sm:$0xff]   ;;  %p1285_p8 = scmp.lt.s32.totalorder %s1582_s27, %s1283_s9  ;;  %p1286_p10 = scmp.lt.s32.totalorder %s1284_s18, %s1278_s15 }
  0x4c   : > { %1003 = vmatpush3.bf16.msra.mxu0 %v1183_v7  ;;  %v1211_v29 = vld [vmem:[#allocation2 + $0x38] ss:$12 sps:$4 sm:$0xff]   ;;  %v1208_v31 = vld [vmem:[#allocation2 + $0x34] ss:$12 sps:$4 sm:$0xff]   ;;  %v1212_v32 = vld [vmem:[#allocation2 + $0x50] ss:$12 sps:$4 sm:$0xff]   ;;  %p1281_p6 = pneg %p1280_p4 }
  0x4d   : > { %1004 = vmatprep.subr.bf16.mxu0 %v1184_v8  ;;  %v1207_v30 = vld [vmem:[#allocation2 + $0x18] ss:$12 sps:$4 sm:$0xff]   ;;  %v1219_v33 = vld [vmem:[#allocation2 + $0x68] ss:$12 sps:$4 sm:$0xff]   ;;  %v1210_v34 = vld [vmem:[#allocation2 + $0x30] ss:$12 sps:$4 sm:$0xff]   ;;  %p1287_p0 = por %p1286_p10, %p1285_p8 }
  0x4e   : > { %1069 = vmatpush3.bf16.msra.mxu1 %v1185_v9  ;;  %v1213_v35 = vld [vmem:[#allocation2 + $0x4c] ss:$12 sps:$4 sm:$0xff]   ;;  %v1215_v37 = vld [vmem:[#allocation2 + $0x48] ss:$12 sps:$4 sm:$0xff]   ;;  %v1216_v38 = vld [vmem:[#allocation2 + $0x64] ss:$12 sps:$4 sm:$0xff]  }
  0x4f   : > { %1070 = vmatprep.subr.bf16.mxu1 %v1188_v12  ;;  %v1220_v36 = vld [vmem:[#allocation2 + $0x80] ss:$12 sps:$4 sm:$0xff]   ;;  %v1221_v40 = vld [vmem:[#allocation2 + $0x7c] ss:$12 sps:$4 sm:$0xff]   ;;  %v1223_v41 = vld [vmem:[#allocation2 + $0x78] ss:$12 sps:$4 sm:$0xff]   ;;  %p1288_p1 = pnand %p1287_p0, %p1281_p6 }
  0x50   : > { %1005 = vmatpush3.bf16.msra.mxu0 %v1186_v10  ;;  %v1218_v39 = vld [vmem:[#allocation2 + $0x60] ss:$12 sps:$4 sm:$0xff]  }
  0x51   : > { %1006 = vmatprep.subr.bf16.mxu0 %v1187_v11  ;;  %v1547_v44 = vld [vmem:[%s289_s25] ss:$0 sm:$0xff] }
  0x52   : > { %1071 = vmatpush3.bf16.msra.mxu1 %v1188_v12 }
  0x53   : > { %1072 = vmatprep.subr.bf16.mxu1 %v1191_v14 }
  0x54   : > { %1007 = vmatpush3.bf16.msra.mxu0 %v1189_v13 }
  0x55   : > { %1008 = vmatprep.subr.bf16.mxu0 %v1190_v15 }
  0x56   : > { %1073 = vmatpush3.bf16.msra.mxu1 %v1191_v14 }
  0x57   : > { %1074 = vmatprep.subr.bf16.mxu1 %v1194_v17 }
  0x58   : > { %1009 = vmatpush3.bf16.msra.mxu0 %v1192_v16 }
  0x59   : > { %1010 = vmatprep.subr.bf16.mxu0 %v1193_v18 }
  0x5a   : > { %1075 = vmatpush3.bf16.msra.mxu1 %v1194_v17 }
  0x5b   : > { %1076 = vmatprep.subr.bf16.mxu1 %v1197_v21 }
  0x5c   : > { %1011 = vmatpush3.bf16.msra.mxu0 %v1195_v19 }
  0x5d   : > { %1012 = vmatprep.subr.bf16.mxu0 %v1196_v20 }
  0x5e   : > { %1077 = vmatpush3.bf16.msra.mxu1 %v1197_v21 }
  0x5f   : > { %1078 = vmatprep.subr.bf16.mxu1 %v1202_v25 }
  0x60   : > { %1013 = vmatpush3.bf16.msra.mxu0 %v1198_v23 }
  0x62   : > { %1079 = vmatpush3.bf16.msra.mxu1 %v1202_v25 }
  0x63   : > { %644 = vmatmul.mubr.bf16.vlgmr.msra.gmra.mxu0 %v1199_v26 }
  0x64   : > { %651 = vmatprep.mubr.bf16.mxu0 %v1205_v27 }
  0x65   : > { %1081 = vmatmul.mubr.bf16.vlgmr.msra.gmra.mxu1 %v1204_v28 }
  0x66   : > { %1084 = vmatprep.mubr.bf16.mxu1 %v1211_v29 }
  0x6b   : > { %652 = vmatmul.mubr.bf16.gmra.mxu0 %v1207_v30 }
  0x6c   : > { %659 = vmatprep.mubr.bf16.mxu0 %v1208_v31 }
  0x6d   : > { %1085 = vmatmul.mubr.bf16.gmra.mxu1 %v1212_v32 }
  0x6e   : > { %1088 = vmatprep.mubr.bf16.mxu1 %v1219_v33 }
  0x73   : > { %660 = vmatmul.mubr.bf16.gmra.mxu0 %v1210_v34 }
  0x74   : > { %667 = vmatprep.mubr.bf16.mxu0 %v1213_v35 }
  0x75   : > { %1089 = vmatmul.mubr.bf16.gmra.mxu1 %v1220_v36 }
  0x7b   : > { %668 = vmatmul.mubr.bf16.gmra.mxu0 %v1215_v37 }
  0x7c   : > { %675 = vmatprep.mubr.bf16.mxu0 %v1216_v38 }
  0x83   : > { %676 = vmatmul.mubr.bf16.gmra.mxu0 %v1218_v39 }
  0x84   : > { %683 = vmatprep.mubr.bf16.mxu0 %v1221_v40 }
  0x8b   : > { %684 = vmatmul.mubr.bf16.gmra.mxu0 %v1223_v41 }
 0x123   : > { %v1014_v42 = vpop.f32.mrf.mxu0 }
 0x125   : > { %v1015_v43 = vpop.f32.mrf.mxu0  ;;  %v1082_v46 = vpop.f32.mrf.mxu1 }
 0x126   : > { %v1016_v45 = vadd.f32 %v1015_v43, %v1014_v42 }
 0x127   : > { %v1017_v47 = vpop.f32.mrf.mxu0  ;;  %v726_v49 = vpop.f32.mrf.mxu1 }
 0x128   : > { %v646_v48 = vadd.f32 %v1016_v45, %v1547_v44 }
 0x129   : > { %v1018_v50 = vpop.f32.mrf.mxu0  ;;  %v1083_v53 = vpop.f32.mrf.mxu1 }
 0x12a   : > { %v1019_v51 = vadd.f32 %v1018_v50, %v1017_v47  ;;  %v727_v52 = vadd.f32 %v726_v49, %v646_v48 }
 0x12b   : > { %v1020_v54 = vpop.f32.mrf.mxu0  ;;  %v729_v57 = vpop.f32.mrf.mxu1 }
 0x12c   : > { %v773_v55 = vmax.f32 %v727_v52, 0.0  ;;  %v649_v56 = vadd.f32 %v1019_v51, %v1547_v44 }
 0x12d   : > { %v1021_v58 = vpop.f32.mrf.mxu0  ;;  %v1086_v62 = vpop.f32.mrf.mxu1 }
 0x12e   : > { %785 = vst [vmem:[%s1552_s4] sm:$0xff] %v773_v55  ;;  %v1022_v59 = vadd.f32 %v1021_v58, %v1020_v54  ;;  %v730_v60 = vadd.f32 %v729_v57, %v649_v56 }
 0x12f   : > { %v1023_v61 = vpop.f32.mrf.mxu0  ;;  %v742_v5 = vpop.f32.mrf.mxu1 }
 0x130   : > { %v654_v63 = vadd.f32 %v1022_v59, %v1547_v44  ;;  %v774_v0 = vmax.f32 %v730_v60, 0.0 }
 0x131   : > { %v1024_v1 = vpop.f32.mrf.mxu0  ;;  %v1087_v12 = vpop.f32.mrf.mxu1 }
 0x132   : > { %v735_v2 = vadd.f32 %v1082_v46, %v654_v63  ;;  %786 = vst [vmem:[%s1552_s4 + $0x8] sm:$0xff] %v774_v0  ;;  %v1025_v3 = vadd.f32 %v1024_v1, %v1023_v61 }
 0x133   : > { %v1026_v4 = vpop.f32.mrf.mxu0  ;;  %v745_v19 = vpop.f32.mrf.mxu1 }
 0x134   : > { %v775_v6 = vmax.f32 %v735_v2, 0.0  ;;  %v657_v7 = vadd.f32 %v1025_v3, %v1547_v44 }
 0x135   : > { %v1027_v8 = vpop.f32.mrf.mxu0  ;;  %v1090_v26 = vpop.f32.mrf.mxu1 }
 0x136   : > { %787 = vst [vmem:[%s1552_s4 + $0x10] sm:$0xff] %v775_v6  ;;  %v738_v9 = vadd.f32 %v1083_v53, %v657_v7  ;;  %v1028_v10 = vadd.f32 %v1027_v8, %v1026_v4 }
 0x137   : > { %v1029_v11 = vpop.f32.mrf.mxu0  ;;  %v758_v33 = vpop.f32.mrf.mxu1 }
 0x138   : > { %v776_v13 = vmax.f32 %v738_v9, 0.0  ;;  %v662_v14 = vadd.f32 %v1028_v10, %v1547_v44 }
 0x139   : > { %v1030_v15 = vpop.f32.mrf.mxu0  ;;  %v1091_v40 = vpop.f32.mrf.mxu1 }
 0x13a   : > { %788 = vst [vmem:[%s1552_s4 + $0x18] sm:$0xff] %v776_v13  ;;  %v1031_v16 = vadd.f32 %v1030_v15, %v1029_v11  ;;  %v743_v17 = vadd.f32 %v742_v5, %v662_v14 }
 0x13b   : > { %v1032_v18 = vpop.f32.mrf.mxu0  ;;  %v761_v48 = vpop.f32.mrf.mxu1 }
 0x13c   : > { %v777_v20 = vmax.f32 %v743_v17, 0.0  ;;  %v665_v21 = vadd.f32 %v1031_v16, %v1547_v44 }
 0x13d   : > { %v1033_v22 = vpop.f32.mrf.mxu0 }
 0x13e   : > { %789 = vst [vmem:[%s1552_s4 + $0x20] sm:$0xff] %v777_v20  ;;  %v1034_v23 = vadd.f32 %v1033_v22, %v1032_v18  ;;  %v746_v24 = vadd.f32 %v745_v19, %v665_v21 }
 0x13f   : > { %v1035_v25 = vpop.f32.mrf.mxu0 }
 0x140   : > { %v670_v27 = vadd.f32 %v1034_v23, %v1547_v44  ;;  %v778_v28 = vmax.f32 %v746_v24, 0.0 }
 0x141   : > { %v1036_v29 = vpop.f32.mrf.mxu0 }
 0x142   : > { %v751_v30 = vadd.f32 %v1086_v62, %v670_v27  ;;  %790 = vst [vmem:[%s1552_s4 + $0x28] sm:$0xff] %v778_v28  ;;  %v1037_v31 = vadd.f32 %v1036_v29, %v1035_v25 }
 0x143   : > { %v1038_v32 = vpop.f32.mrf.mxu0 }
 0x144   : > { %v779_v34 = vmax.f32 %v751_v30, 0.0  ;;  %v673_v35 = vadd.f32 %v1037_v31, %v1547_v44 }
 0x145   : > { %v1039_v36 = vpop.f32.mrf.mxu0 }
 0x146   : > { %791 = vst [vmem:[%s1552_s4 + $0x30] sm:$0xff] %v779_v34  ;;  %v754_v37 = vadd.f32 %v1087_v12, %v673_v35  ;;  %v1040_v38 = vadd.f32 %v1039_v36, %v1038_v32 }
 0x147   : > { %v1041_v39 = vpop.f32.mrf.mxu0 }
 0x148   : > { %v780_v41 = vmax.f32 %v754_v37, 0.0  ;;  %v678_v42 = vadd.f32 %v1040_v38, %v1547_v44 }
 0x149   : > { %v1042_v43 = vpop.f32.mrf.mxu0 }
 0x14a   : > { %792 = vst [vmem:[%s1552_s4 + $0x38] sm:$0xff] %v780_v41  ;;  %v1043_v45 = vadd.f32 %v1042_v43, %v1041_v39  ;;  %v759_v46 = vadd.f32 %v758_v33, %v678_v42 }
 0x14b   : > { %v1044_v47 = vpop.f32.mrf.mxu0 }
 0x14c   : > { %v781_v49 = vmax.f32 %v759_v46, 0.0  ;;  %v681_v50 = vadd.f32 %v1043_v45, %v1547_v44 }
 0x14d   : > { %v1045_v51 = vpop.f32.mrf.mxu0 }
 0x14e   : > { %793 = vst [vmem:[%s1552_s4 + $0x40] sm:$0xff] %v781_v49  ;;  %v1046_v52 = vadd.f32 %v1045_v51, %v1044_v47  ;;  %v762_v53 = vadd.f32 %v761_v48, %v681_v50 }
 0x14f   : > { %v1047_v54 = vpop.f32.mrf.mxu0 }
 0x150   : > { %v686_v55 = vadd.f32 %v1046_v52, %v1547_v44  ;;  %v782_v56 = vmax.f32 %v762_v53, 0.0 }
 0x151   : > { %v1048_v57 = vpop.f32.mrf.mxu0 }
 0x152   : > { %v767_v58 = vadd.f32 %v1090_v26, %v686_v55  ;;  %794 = vst [vmem:[%s1552_s4 + $0x48] sm:$0xff] %v782_v56  ;;  %v1049_v59 = vadd.f32 %v1048_v57, %v1047_v54 }
 0x154   : > { %v783_v60 = vmax.f32 %v767_v58, 0.0  ;;  %v689_v61 = vadd.f32 %v1049_v59, %v1547_v44 }
 0x156   : > { %795 = vst [vmem:[%s1552_s4 + $0x50] sm:$0xff] %v783_v60  ;;  %v770_v62 = vadd.f32 %v1091_v40, %v689_v61 }
 0x158   : > { %v784_v63 = vmax.f32 %v770_v62, 0.0 }
 0x15a   : > { %796 = vst [vmem:[%s1552_s4 + $0x58] sm:$0xff] %v784_v63 }
 0x15b   : > { %1291 = shalt.err (!%p1288_p1)
}
 0x15c   : > { %s1292_s19 = scalar_lea.hbm %s1580_s7, 1536  ;;  %s1296_s17 = scalar_lea.hbm %s1634_s3, 3072 }
 0x15d   : > { %p1293_p5 = scmp.ne.s32.totalorder %s1580_s7, %s1292_s19  ;;  %p1297_p11 = scmp.lt.s32.totalorder %s1580_s7, %s1634_s3 }
 0x15e   : > { %p1298_p2 = scmp.lt.s32.totalorder %s1296_s17, %s1292_s19 }
 0x15f   : > { %p1294_p7 = pnand %p1293_p5, %p1651_p13 }
 0x160   : > { %p1299_p3 = por %p1298_p2, %p1297_p11 }
 0x161   : > { %p1295_p9 = pneg %p1294_p7 }
 0x163   : > { %p1300_p12 = pnand %p1299_p3, %p1295_p9 }
 0x165   : > { %1303 = shalt.err (!%p1300_p12)
}
 0x166   : > { %s1372_s25 = smov 128   ;;  %s1373_s29 = smov 256  }
 0x167   : > { %s1374_s4 = smov 8  }
 0x168   : > { %1101 = dma.vmem_to_hbm [thread:$0]  (%p1651_p13), %s1582_s27, 1536, %s1580_s7, %s798_s8, %s1372_s25, %s1373_s29, %s1374_s4  }
 0x169 PF: > { %s1652_s28 = sld [smem:[#allocation12_spill]]  ;;  %s830_s6 = sand.u32 1, %s1342_s12  }
 0x16a   : > { %s1653_s5 = sld [smem:[#allocation11_spill]]  ;;  %s831_s15 = scalar_lea.sflag [#allocation4], %s830_s6 }
 0x16f   : > { %p1654_p4 = scmp.ne.s32.totalorder %s1652_s28, 0 }
 0x170   : > { %p1655_p6 = scmp.ge.s32.totalorder %s1653_s5, 2 }
 0x172   : > { %p1112_p8 = pnand %p1655_p6, %p1654_p4 }
 0x174   : > { %p1113_p10 = pneg %p1112_p8 }
 0x176   : > { %1337 = dma.done.wait (%p1113_p10), %s831_s15, 1536  }
 0x177   : > { %1339 = vsyncadd (%p1113_p10), %s831_s15, 4294965760  ;;  %s20_s17 = sadd.s32 1, %s1653_s5   ;;  %s1656_s12 = smov %s1346_s13 }
 0x178   : > { %p17_p0 = scmp.ge.s32.totalorder %s20_s17, 4   ;;  %s1657_s13 = smov %s1350_s14 }
 0x179   : > { %s1658_s14 = smov %s1495_s24  ;;  %s1659_s15 = smov %s1358_s16 }
 0x17a   : > { %s1660_s16 = smov %s1662_s30  ;;  %19 = sbr.rel (!%p17_p0) target bundleno = 7 (0x7), region = 86 }
 0x17f   :  { %836 = vsyncpa [#allocation3], 1 }
 0x180   :  { %838 = vsyncpa [#allocation3 + $0x1], 1 }
 0x181   :  { %839 = vsyncpa [#allocation6], 1 }
 0x182   :  { %841 = vsyncpa [#allocation6 + $0x1], 1 }
 0x183   :  { %842 = vsyncpa [#allocation4], 1 }
 0x184   :  { %844 = vsyncpa [#allocation4 + $0x1], 1 }

</bundles_post_ra>
